<compile_context>
chip_gen: v5e
topology: v5e:2x2
jax: 0.10.0
libtpu: 0.0.40
codegen_flags: <defaults>
</compile_context>

<pallas_src>
import functools

import jax
import jax.numpy as jnp
from jax.experimental import pallas as pl
from jax.experimental.pallas import tpu as pltpu

_NOUT = 8  # packed head width: cols 0:3 aspect, cols 3:6 opinion, cols 6:8 zero pad


def _round_up(x, m):
    return ((x + m - 1) // m) * m


def _vmem_budgets():
    """Generation-aware VMEM budgets (v5e/v6e: 128 MiB per TC, v7x: 64 MiB per TC)."""
    cap = 64 * 1024 * 1024  # conservative default = v7x per-TensorCore VMEM
    try:
        kind = jax.devices()[0].device_kind.lower()
    except Exception:
        kind = ""
    if any(tag in kind for tag in ("v5", "v6")):
        cap = 128 * 1024 * 1024
    try:
        info_cap = int(getattr(pltpu.get_tpu_info(), "vmem_capacity_bytes", 0))
        if info_cap > 0:
            cap = min(cap, info_cap)  # trust the smaller of the two estimates
    except Exception:
        pass
    tile_budget = (cap * 55) // 100                        # bytes for pipelined tiles
    vmem_limit = min((cap * 3) // 4, cap - (8 << 20))      # scoped-VMEM ceiling
    return int(tile_budget), int(vmem_limit)


_TILE_VMEM_BUDGET, _VMEM_LIMIT_BYTES = _vmem_budgets()


def _ffnn_kernel(h_ref, w_ref, b_ref, out_ref):
    # h_ref: (tm, H)  w_ref: (H, 8)  b_ref: (1, 8)  out_ref: (tm, 8)
    acc = jnp.dot(h_ref[...], w_ref[...], preferred_element_type=jnp.float32)
    out_ref[...] = (acc + b_ref[...]).astype(out_ref.dtype)


def _choose_tile_m(M, H, in_itemsize, out_itemsize, tile_m):
    """Largest sublane-aligned row tile that fits VMEM, with a >=2-step grid."""
    sub = max(8, 32 // in_itemsize)                  # 8 for f32, 16 for bf16, 32 for int8
    per_row = 2 * (H * in_itemsize + _NOUT * out_itemsize)     # double-buffered in + out
    cap = max(sub, (_TILE_VMEM_BUDGET // per_row) // sub * sub)
    two_step = _round_up(-(-M // 2), sub)            # <= half the rows -> grid >= 2 steps
    tm = min(tile_m, cap, two_step, _round_up(M, sub))
    return max(sub, int(tm))


@functools.partial(jax.jit, static_argnames=("off", "tile_m"))
def deberta_ffnn_heads(hidden_states, w_slab, b_slab, *, off, tile_m=4096):
    """Apply the packed (H, 8) linear-head slab to [B, S, H] hidden states.

    `off` selects the head (0 = aspect, 3 = opinion); returns [B, S, 3] logits.
    The column/row slices are fused under this jit (one small copy, no extra dispatch).
    """
    B, S, H = hidden_states.shape
    M = B * S
    out_dtype = hidden_states.dtype
    h2d = hidden_states.reshape(M, H)

    tm = _choose_tile_m(M, H, h2d.dtype.itemsize, jnp.dtype(out_dtype).itemsize, tile_m)
    grid = (pl.cdiv(M, tm),)
    # Only the (tiny) output allocation is rounded up so edge-block writes stay
    # in-bounds; the [M, H] input is NOT padded/copied -- Pallas pads the ragged
    # edge block reads itself and the bias-only garbage rows are sliced off below.
    M_out = grid[0] * tm

    logits = pl.pallas_call(
        _ffnn_kernel,
        out_shape=jax.ShapeDtypeStruct((M_out, _NOUT), out_dtype),
        grid_spec=pltpu.PrefetchScalarGridSpec(
            num_scalar_prefetch=0,
            grid=grid,
            in_specs=[
                pl.BlockSpec((tm, H), lambda i: (i, 0)),      # row tile of hidden states
                pl.BlockSpec((H, _NOUT), lambda i: (0, 0)),   # packed weight slab (tiny)
                pl.BlockSpec((1, _NOUT), lambda i: (0, 0)),   # packed bias slab
            ],
            out_specs=pl.BlockSpec((tm, _NOUT), lambda i: (i, 0)),
        ),
        compiler_params=pltpu.CompilerParams(
            dimension_semantics=("parallel",),
            vmem_limit_bytes=_VMEM_LIMIT_BYTES,
        ),
    )(h2d, w_slab, b_slab)
    return logits[:M, off:off + 3].reshape(B, S, 3)


class DebertaFFNNPallas:
    """JAX/Pallas port of DebertaFFNN's linear heads.

    The pretrained DeBERTa-v2 backbone cannot be reproduced in-script, so the backbone
    output `hidden_states` ([B, S, H]) is taken directly as the input of __call__; the
    two Linear(hidden_size, 3) heads run in the Pallas kernel.
    """

    _HEAD_OFFSET = {"aspect": 0, "opinion": 3}

    def __init__(self, hidden_size, key):
        k1, k2, k3, k4 = jax.random.split(key, 4)
        bound = 1.0 / jnp.sqrt(jnp.float32(hidden_size))
        # Deterministic init mimicking nn.Linear's uniform(-1/sqrt(H), 1/sqrt(H)),
        # stored in PyTorch (out, in) layout for reference math.
        self.asp_w = jax.random.uniform(k1, (3, hidden_size), jnp.float32, -bound, bound)
        self.asp_b = jax.random.uniform(k2, (3,), jnp.float32, -bound, bound)
        self.opi_w = jax.random.uniform(k3, (3, hidden_size), jnp.float32, -bound, bound)
        self.opi_b = jax.random.uniform(k4, (3,), jnp.float32, -bound, bound)

        # Pack both heads once (no per-call transpose/cast) into a narrow slab:
        # cols 0:3 -> aspect head, cols 3:6 -> opinion head, cols 6:8 zero.
        w_slab = jnp.zeros((hidden_size, _NOUT), jnp.float32)
        w_slab = w_slab.at[:, 0:3].set(self.asp_w.T)
        w_slab = w_slab.at[:, 3:6].set(self.opi_w.T)
        b_slab = jnp.zeros((1, _NOUT), jnp.float32)
        b_slab = b_slab.at[0, 0:3].set(self.asp_b)
        b_slab = b_slab.at[0, 3:6].set(self.opi_b)
        self.w_slab = w_slab
        self.b_slab = b_slab                                   # bias stays f32 (f32 acc)
        self.w_slab_bf16 = w_slab.astype(jnp.bfloat16)         # precomputed bf16 copy

    def _weights_for(self, dtype):
        return self.w_slab_bf16 if dtype == jnp.bfloat16 else self.w_slab

    def __call__(self, hidden_states, answer=""):
        # TODO(synk): DebertaV2Model.from_pretrained backbone has no clean Pallas
        # equivalent here; hidden_states stands in for its first output.
        logits = None
        if answer in self._HEAD_OFFSET:
            logits = deberta_ffnn_heads(
                hidden_states,
                self._weights_for(hidden_states.dtype),
                self.b_slab,
                off=self._HEAD_OFFSET[answer],
            )
        return (hidden_states, logits)


if __name__ == "__main__":
    B, S, H = 2, 8, 32
    key = jax.random.PRNGKey(0)
    k_h, k_p = jax.random.split(key)

    hidden_states = jax.random.normal(k_h, (B, S, H), dtype=jnp.float32)
    model = DebertaFFNNPallas(H, k_p)

    hs_a, logits_asp = model(hidden_states, answer="aspect")
    hs_o, logits_opi = model(hidden_states, answer="opinion")
    jax.block_until_ready((hs_a, logits_asp, hs_o, logits_opi))

    # Reference check against plain JAX linear heads.
    ref_asp = hidden_states @ model.asp_w.T + model.asp_b
    ref_opi = hidden_states @ model.opi_w.T + model.opi_b
    assert logits_asp.shape == (B, S, 3)
    assert logits_opi.shape == (B, S, 3)
    assert jnp.allclose(logits_asp, ref_asp, atol=1e-5, rtol=1e-5)
    assert jnp.allclose(logits_opi, ref_opi, atol=1e-5, rtol=1e-5)
    assert jnp.array_equal(hs_a, hidden_states)

    # Ragged M (not a tile / sublane multiple): exercises the no-pad cdiv path and a
    # multi-step grid; edge-block rows are computed in-bounds and sliced off in-jit.
    B2, S2 = 3, 100
    hs2 = jax.random.normal(jax.random.PRNGKey(1), (B2, S2, H), dtype=jnp.float32)
    _, logits2 = model(hs2, answer="opinion")
    jax.block_until_ready(logits2)
    ref2 = hs2 @ model.opi_w.T + model.opi_b
    assert logits2.shape == (B2, S2, 3)
    assert jnp.allclose(logits2, ref2, atol=1e-5, rtol=1e-5)

    # bf16 fast path: bf16 HBM read + native bf16 MXU operands, f32 accumulation.
    hs_bf16 = hidden_states.astype(jnp.bfloat16)
    _, logits_bf16 = model(hs_bf16, answer="aspect")
    jax.block_until_ready(logits_bf16)
    ref_bf16 = (hs_bf16.astype(jnp.float32)
                @ model.w_slab_bf16.astype(jnp.float32)[:, 0:3] + model.asp_b)
    assert logits_bf16.shape == (B, S, 3)
    assert logits_bf16.dtype == jnp.bfloat16
    assert jnp.allclose(logits_bf16.astype(jnp.float32), ref_bf16, atol=1e-1, rtol=5e-2)

    print("KERNEL_OK")
</pallas_src>

<mosaic_0001>
module attributes {stable_mosaic.version = 11 : i64} {
  func.func @_ffnn_kernel(%arg0: i32, %arg1: memref<8x32xf32, #tpu.memory_space<vmem>>, %arg2: memref<32x8xf32, #tpu.memory_space<vmem>>, %arg3: memref<1x8xf32, #tpu.memory_space<vmem>>, %arg4: memref<8x8xf32, #tpu.memory_space<vmem>>) attributes {dimension_semantics = [#tpu.dimension_semantics<parallel>], iteration_bounds = array<i64: 2>, scalar_prefetch = 0 : i64, scratch_operands = 0 : i64, tpu.core_type = #tpu.core_type<tc>, window_params = [{transform_indices = @transform_0, window_bounds = array<i64: 8, 32>}, {pipeline_mode = #tpu.pipeline_mode<synchronous>, transform_indices = @transform_1, window_bounds = array<i64: 32, 8>}, {pipeline_mode = #tpu.pipeline_mode<synchronous>, transform_indices = @transform_2, window_bounds = array<i64: 1, 8>}, {transform_indices = @transform_3, window_bounds = array<i64: 8, 8>}]} {
    %c0 = arith.constant 0 : index
    %c0_0 = arith.constant 0 : index
    %0 = vector.load %arg1[%c0, %c0_0] : memref<8x32xf32, #tpu.memory_space<vmem>>, vector<8x32xf32>
    %c0_1 = arith.constant 0 : index
    %c0_2 = arith.constant 0 : index
    %1 = vector.load %arg2[%c0_1, %c0_2] : memref<32x8xf32, #tpu.memory_space<vmem>>, vector<32x8xf32>
    %cst = arith.constant dense<0.000000e+00> : vector<8x8xf32>
    %2 = tpu.matmul %0, %1, %cst {dimension_numbers = #tpu.dot_dimension_numbers<[1], [0], [0], [1], [0, 0, 1, 1], [], []>} : vector<8x32xf32>, vector<32x8xf32>, vector<8x8xf32> -> vector<8x8xf32>
    %c0_3 = arith.constant 0 : index
    %c0_4 = arith.constant 0 : index
    %3 = vector.load %arg3[%c0_3, %c0_4] : memref<1x8xf32, #tpu.memory_space<vmem>>, vector<1x8xf32>
    %4 = vector.broadcast %3 : vector<1x8xf32> to vector<8x8xf32>
    %5 = arith.addf %2, %4 : vector<8x8xf32>
    %c0_5 = arith.constant 0 : index
    %c0_6 = arith.constant 0 : index
    %6 = vector.load %arg4[%c0_5, %c0_6] : memref<8x8xf32, #tpu.memory_space<vmem>>, vector<8x8xf32>
    tpu.vector_store %arg4[%c0_5, %c0_6], %5 {strides = array<i32>} : memref<8x8xf32, #tpu.memory_space<vmem>>, vector<8x8xf32>,
    return
  }
  func.func @transform_0(%arg0: i32) -> (i32, i32) {
    %c0_i32 = arith.constant 0 : i32
    %c0_i32_0 = arith.constant 0 : i32
    return %arg0, %c0_i32 : i32, i32
  }
  func.func @transform_1(%arg0: i32) -> (i32, i32) {
    %c0_i32 = arith.constant 0 : i32
    %c0_i32_0 = arith.constant 0 : i32
    %c0_i32_1 = arith.constant 0 : i32
    return %c0_i32, %c0_i32_0 : i32, i32
  }
  func.func @transform_2(%arg0: i32) -> (i32, i32) {
    %c0_i32 = arith.constant 0 : i32
    %c0_i32_0 = arith.constant 0 : i32
    %c0_i32_1 = arith.constant 0 : i32
    return %c0_i32, %c0_i32_0 : i32, i32
  }
  func.func @transform_3(%arg0: i32) -> (i32, i32) {
    %c0_i32 = arith.constant 0 : i32
    %c0_i32_0 = arith.constant 0 : i32
    return %arg0, %c0_i32 : i32, i32
  }
}

</mosaic_0001>

<bundles_post_ra>
// kernel: deberta_ffnn_heads.1
= control target key start
LH: loop header
LB: loop body
LE: loop exit
PB: predicated region body
PF: predicated region fallthrough
CT: control target
= control target key end

     0   :  { %s301_s12 = smov 0   ;;  %s333_s0 = inlined_call_operand.vmem [shape: f32[16,32], index: 0, kind: input, shape index: {}]   ;;  %s334_s1 = inlined_call_operand.vmem [shape: f32[32,8], index: 1, kind: input, shape index: {}]   ;;  %s335_s2 = inlined_call_operand.vmem [shape: f32[1,8], index: 2, kind: input, shape index: {}]   ;;  %s336_s3 = inlined_call_operand.vmem [shape: f32[16,8], index: 3, kind: output, shape index: {}]  }
   0x1 LB: > { %s254_s13 = sadd.s32 4294967295, %s279_s12   ;;  %p258_p0 = scmp.ge.s32.totalorder %s279_s12, 1  ;;  %s279_s12 = sphi %s301_s12, %s13_s12  }
   0x2   : > { %p136_p1 = scmp.lt.s32.totalorder %s279_s12, 3 }
   0x4   : > { %p137_p2 = pnand %p258_p0, %p136_p1 }
   0x5   : > { %p158_p3 = scmp.lt.s32.totalorder (!%p137_p2), %s254_s13, 1 }
   0x6   : > { %140 = sbr.rel (%p137_p2) target bundleno = 148 (0x94), region = 32 }
   0xb   : > { %v170_v0 = vld [vmem:[%s334_s1 + $0x18] sm:$0xff]  ;;  %v169_v1 = vld [vmem:[%s334_s1 + $0x10] sm:$0xff]  ;;  %v168_v2 = vld [vmem:[%s334_s1 + $0x8] sm:$0xff]  ;;  %s338_s13 = smov (!%p158_p3, %s254_s13), 1  ;;  %vm175_vm0 = vcmask 261120   ;;  %vm199_vm1 = vcmask 64512  }
   0xc   : > { %191 = vmatpush.msra.mxu0 %v170_v0  ;;  %v167_v3 = vld [vmem:[%s334_s1] sm:$0xff]  ;;  %s259_s22 = sshll.u32 %s338_s13, 3 }
   0xd   : > { %s161_s25 = scalar_lea.vmem %s333_s0, %s259_s22  ;;  %v272_v5 = vld [vmem:[%s335_s2] ss:$0 sm:$0xff]  ;;  %s165_s30 = scalar_lea.vmem %s336_s3, %s259_s22 }
   0xe   : > { %192 = vmatpush.msra.mxu0 %v169_v1  ;;  %v166_v4 = vld [vmem:[%s161_s25] sm:$0xff] }
  0x10   : > { %193 = vmatpush.msra.mxu0 %v168_v2 }
  0x12   : > { %194 = vmatpush.msra.mxu0 %v167_v3 }
  0x13   : > { %261 = vmatmul.msk.f32.vlgmr.msra.gmra.mxu0 %vm175_vm0, %v166_v4 }
  0x90   : > { %v196_v6 = vpop.f32.mrf.mxu0 }
  0x91   : > { %v197_v7 = vadd.f32 %v272_v5, %v196_v6 }
  0x93   : > { %200 = vst.msk [vmem:[%s165_s30] sm:$0xff] %vm199_vm1, %v197_v7 }
  0x94 PF: > { %s13_s12 = sadd.s32 1, %s279_s12  }
  0x95   : > { %p10_p4 = scmp.ge.s32.totalorder %s13_s12, 4  }
  0x97   :  { %12 = sbr.rel (!%p10_p4) target bundleno = 1 (0x1), region = 62 }

</bundles_post_ra>
